<compile_context>
chip_gen: v7x
topology: tpu7x:2x2x1
jax: 0.10.0
libtpu: 0.0.40
codegen_flags: <defaults>
</compile_context>

<pallas_src>
import jax
import jax.numpy as jnp
from jax.experimental import pallas as pl
from jax.experimental.pallas import tpu as pltpu


_LANE = 128
_F32_BYTES = 4


# ------------------------------ Pallas kernels -------------------------------

def _conv1x1_kernel_2d(x_ref, w_ref, b_ref, o_ref):
    # x_ref: (Cin, T)   w_ref: (Cout, Cin)   b_ref: (Cout, 1)   o_ref: (Cout, T)
    acc = jnp.dot(w_ref[...], x_ref[...], preferred_element_type=jnp.float32)
    o_ref[...] = (acc + b_ref[...]).astype(o_ref.dtype)


def _conv1x1_kernel_batched(x_ref, w_ref, b_ref, o_ref):
    # x_ref: (Nb, Cin, T)   o_ref: (Nb, Cout, T).  Nb is a small static constant;
    # unroll so every step is a clean 2-D MXU matmul + lane-dense store.
    w = w_ref[...]
    bias = b_ref[...]
    for i in range(x_ref.shape[0]):
        acc = jnp.dot(w, x_ref[i], preferred_element_type=jnp.float32)
        o_ref[i] = (acc + bias).astype(o_ref.dtype)


# ------------------------------ tiling heuristic ------------------------------

def _choose_tiling(N, Cin, Cout, HW,
                   vmem_budget_bytes=24 * 1024 * 1024,
                   target_block_bytes=512 * 1024):
    """Pick (Nb, T): batch block and 128-aligned spatial tile.

    VMEM accounting (live buffers):
      x stream:   2 (double-buffer) * Nb * Cin  * T * 4
      out stream: 2 (double-buffer) * Nb * Cout * T * 4
      w, b:       single-buffered (pipeline_mode=pl.Buffered(1))
    The 24 MiB budget is conservative for v7x (64 MiB physical VMEM).
    """
    w_bytes = (Cout * Cin + Cout * _LANE) * _F32_BYTES          # bias padded to a lane
    per_col = 2 * (Cin + Cout) * _F32_BYTES                     # bytes per streamed column
    stream_budget = max(vmem_budget_bytes - w_bytes, 4 * _LANE * per_col)

    # --- spatial tile: full H*W if it fits the budget, else a 128-multiple cap.
    t_cap = max(_LANE, stream_budget // per_col)                 # with Nb = 1
    if HW <= t_cap:
        T = HW                                                   # full last dim: always legal
    else:
        T = (t_cap // _LANE) * _LANE                             # tail handled by cdiv grid
    spatial_steps = -(-HW // T)

    # --- batch block: amortize per-step overhead for small-spatial workloads,
    # but keep >= 2 total grid steps when possible (v7x has 2 TensorCores).
    nb_cap = min(N, max(1, stream_budget // (per_col * T)))
    if spatial_steps < 2:
        nb_cap = min(nb_cap, max(1, N // 2))
    Nb = 1
    for cand in range(1, nb_cap + 1):
        if N % cand:
            continue
        Nb = cand
        if cand * Cin * T * _F32_BYTES >= target_block_bytes:
            break
    return Nb, T


# ------------------------------ host wrapper ---------------------------------

def conv_reshape_forward(x, w, b):
    """Equivalent of Conv_reshape.forward: y = Conv2d(in_dim, in_dim//factor, k=1)(x).

    x: (N, Cin, H, W) f32, w: (Cout, Cin, 1, 1), b: (Cout,).  Returns NCHW f32.
    """
    N, Cin, H, W = x.shape
    Cout = w.shape[0]
    HW = H * W

    Nb, T = _choose_tiling(N, Cin, Cout, HW)
    grid = (N // Nb, -(-HW // T))

    xr = x.reshape(N, Cin, HW)        # free reshape of contiguous NCHW
    wm = w.reshape(Cout, Cin)
    bm = b.reshape(Cout, 1)

    # Grid-invariant weight / bias: single-buffered (no pointless double-buffer).
    w_spec = pl.BlockSpec((Cout, Cin), lambda n, s: (0, 0),
                          pipeline_mode=pl.Buffered(1))
    b_spec = pl.BlockSpec((Cout, 1), lambda n, s: (0, 0),
                          pipeline_mode=pl.Buffered(1))

    if Nb == 1:
        kernel = _conv1x1_kernel_2d
        x_spec = pl.BlockSpec((None, Cin, T), lambda n, s: (n, 0, s))
        o_spec = pl.BlockSpec((None, Cout, T), lambda n, s: (n, 0, s))
    else:
        kernel = _conv1x1_kernel_batched
        x_spec = pl.BlockSpec((Nb, Cin, T), lambda n, s: (n, 0, s))
        o_spec = pl.BlockSpec((Nb, Cout, T), lambda n, s: (n, 0, s))

    # Explicit VMEM limit sized from actual usage (v5e default scoped is 16 MiB),
    # kept well under v7x's 64 MiB physical VMEM.
    need = (2 * Nb * (Cin + Cout) * T + Cout * Cin + Cout * _LANE) * _F32_BYTES
    vmem_limit = int(min(max(2 * need, 32 * 1024 * 1024), 48 * 1024 * 1024))

    cost = pl.CostEstimate(
        flops=2 * N * Cout * Cin * HW,
        transcendentals=0,
        bytes_accessed=_F32_BYTES * (N * Cin * HW + N * Cout * HW + Cout * Cin + Cout))

    out = pl.pallas_call(
        kernel,
        out_shape=jax.ShapeDtypeStruct((N, Cout, HW), x.dtype),
        grid=grid,
        in_specs=[x_spec, w_spec, b_spec],
        out_specs=o_spec,
        compiler_params=pltpu.CompilerParams(
            dimension_semantics=("parallel", "parallel"),
            vmem_limit_bytes=vmem_limit),
        cost_estimate=cost,
    )(xr, wm, bm)
    return out.reshape(N, Cout, H, W)


# ----------------------------------- main ------------------------------------

if __name__ == "__main__":
    key = jax.random.PRNGKey(0)
    fwd = jax.jit(conv_reshape_forward)

    def _run_and_check(N, in_dim, factor, H, W, salt):
        out_dim = in_dim // factor
        kx, kw, kb = jax.random.split(jax.random.fold_in(key, salt), 3)
        x = jax.random.normal(kx, (N, in_dim, H, W), jnp.float32)
        # PyTorch Conv2d default init: U(-1/sqrt(fan_in), 1/sqrt(fan_in)), fan_in = in_dim.
        bound = 1.0 / (in_dim ** 0.5)
        w = jax.random.uniform(kw, (out_dim, in_dim, 1, 1), jnp.float32, -bound, bound)
        b = jax.random.uniform(kb, (out_dim,), jnp.float32, -bound, bound)

        out = fwd(x, w, b)
        jax.block_until_ready(out)
        assert out.shape == (N, out_dim, H, W), out.shape
        assert bool(jnp.all(jnp.isfinite(out)))

        ref = jax.lax.conv_general_dilated(
            x, w, window_strides=(1, 1), padding="VALID",
            dimension_numbers=("NCHW", "OIHW", "NCHW")) + b[None, :, None, None]
        assert bool(jnp.allclose(out, ref, atol=1e-5, rtol=1e-5)), (N, in_dim, H, W)

    # Nb == 1 path (squeezed 2-D kernel, grid = (2, 1) -> 2 parallel steps).
    _run_and_check(2, 8, 2, 16, 16, salt=0)
    # Nb == 2 path (batched kernel, small-spatial batching, grid = (2, 1)).
    _run_and_check(4, 8, 2, 16, 16, salt=1)

    print("KERNEL_OK")
</pallas_src>

<mosaic_0001>
module attributes {stable_mosaic.version = 11 : i64} {
  func.func @_conv1x1_kernel_2d(%arg0: i32, %arg1: i32, %arg2: memref<1x8x256xf32, #tpu.memory_space<vmem>>, %arg3: memref<4x8xf32, #tpu.memory_space<vmem>>, %arg4: memref<4x1xf32, #tpu.memory_space<vmem>>, %arg5: memref<1x4x256xf32, #tpu.memory_space<vmem>>) attributes {dimension_semantics = [#tpu.dimension_semantics<parallel>, #tpu.dimension_semantics<parallel>], iteration_bounds = array<i64: 2, 1>, scalar_prefetch = 0 : i64, scratch_operands = 0 : i64, tpu.core_type = #tpu.core_type<tc>, window_params = [{transform_indices = @transform_0, window_bounds = array<i64: 1, 8, 256>}, {pipeline_mode = #tpu.pipeline_mode<synchronous>, transform_indices = @transform_1, window_bounds = array<i64: 4, 8>}, {pipeline_mode = #tpu.pipeline_mode<synchronous>, transform_indices = @transform_2, window_bounds = array<i64: 4, 1>}, {transform_indices = @transform_3, window_bounds = array<i64: 1, 4, 256>}]} {
    %c0 = arith.constant 0 : index
    %c0_0 = arith.constant 0 : index
    %0 = vector.load %arg3[%c0, %c0_0] : memref<4x8xf32, #tpu.memory_space<vmem>>, vector<4x8xf32>
    %c0_1 = arith.constant 0 : index
    %c0_2 = arith.constant 0 : index
    %c0_3 = arith.constant 0 : index
    %1 = vector.load %arg2[%c0_1, %c0_2, %c0_3] : memref<1x8x256xf32, #tpu.memory_space<vmem>>, vector<1x8x256xf32>
    %2 = vector.shape_cast %1 : vector<1x8x256xf32> to vector<8x256xf32>
    %cst = arith.constant dense<0.000000e+00> : vector<4x256xf32>
    %3 = tpu.matmul %0, %2, %cst {dimension_numbers = #tpu.dot_dimension_numbers<[1], [0], [0], [1], [0, 0, 1, 1], [], []>} : vector<4x8xf32>, vector<8x256xf32>, vector<4x256xf32> -> vector<4x256xf32>
    %c0_4 = arith.constant 0 : index
    %c0_5 = arith.constant 0 : index
    %4 = vector.load %arg4[%c0_4, %c0_5] : memref<4x1xf32, #tpu.memory_space<vmem>>, vector<4x1xf32>
    %5 = vector.broadcast %4 : vector<4x1xf32> to vector<4x256xf32>
    %6 = arith.addf %3, %5 : vector<4x256xf32>
    %c0_6 = arith.constant 0 : index
    %c0_7 = arith.constant 0 : index
    %c0_8 = arith.constant 0 : index
    %7 = vector.load %arg5[%c0_6, %c0_7, %c0_8] : memref<1x4x256xf32, #tpu.memory_space<vmem>>, vector<1x4x256xf32>
    %8 = vector.shape_cast %7 : vector<1x4x256xf32> to vector<4x256xf32>
    %9 = vector.shape_cast %6 : vector<4x256xf32> to vector<1x4x256xf32>
    tpu.vector_store %arg5[%c0_6, %c0_7, %c0_8], %9 {strides = array<i32>} : memref<1x4x256xf32, #tpu.memory_space<vmem>>, vector<1x4x256xf32>,
    return
  }
  func.func @transform_0(%arg0: i32, %arg1: i32) -> (i32, i32, i32) {
    %c0_i32 = arith.constant 0 : i32
    %c0_i32_0 = arith.constant 0 : i32
    return %arg0, %c0_i32, %arg1 : i32, i32, i32
  }
  func.func @transform_1(%arg0: i32, %arg1: i32) -> (i32, i32) {
    %c0_i32 = arith.constant 0 : i32
    %c0_i32_0 = arith.constant 0 : i32
    %c0_i32_1 = arith.constant 0 : i32
    return %c0_i32, %c0_i32_0 : i32, i32
  }
  func.func @transform_2(%arg0: i32, %arg1: i32) -> (i32, i32) {
    %c0_i32 = arith.constant 0 : i32
    %c0_i32_0 = arith.constant 0 : i32
    %c0_i32_1 = arith.constant 0 : i32
    return %c0_i32, %c0_i32_0 : i32, i32
  }
  func.func @transform_3(%arg0: i32, %arg1: i32) -> (i32, i32, i32) {
    %c0_i32 = arith.constant 0 : i32
    %c0_i32_0 = arith.constant 0 : i32
    return %arg0, %c0_i32, %arg1 : i32, i32, i32
  }
}

</mosaic_0001>

<bundles_post_ra>
// kernel: conv_reshape_forward.1
= control target key start
LH: loop header
LB: loop body
LE: loop exit
PB: predicated region body
PF: predicated region fallthrough
CT: control target
= control target key end

     0   :  { %s473_s12 = smov 0   ;;  %s475_s13 = smov 0   ;;  %s512_s0 = inlined_call_operand.vmem [shape: f32[2,8,256], index: 0, kind: input, shape index: {}]   ;;  %s513_s1 = inlined_call_operand.vmem [shape: f32[4,8], index: 1, kind: input, shape index: {}]   ;;  %s514_s2 = inlined_call_operand.vmem [shape: f32[4,1], index: 2, kind: input, shape index: {}]   ;;  %s515_s3 = inlined_call_operand.vmem [shape: f32[2,4,256], index: 3, kind: output, shape index: {}]  }
   0x1   :  { %s477_s14 = smov 0  }
   0x2 LB: > { %s25_s15 = sadd.s32 1, %s445_s13  ;;  %p390_p0 = scmp.ge.s32.totalorder %s449_s14, 1  ;;  %s449_s14 = sphi %s477_s14, %s13_s14   ;;  %s445_s13 = sphi %s475_s13, %s517_s13   ;;  %s441_s12 = sphi %s473_s12, %s516_s12  }
   0x3   : > { %p27_p1 = scmp.ge.s32.totalorder %s25_s15, 2  ;;  %p158_p2 = scmp.lt.s32.totalorder %s449_s14, 3 }
   0x5   : > { %s519_s15 = smov (%p27_p1, %s25_s15), 0  ;;  %p159_p3 = pnand %p390_p0, %p158_p2 }
   0x6   : > { %p191_p4 = scmp.lt.s32.totalorder (!%p159_p3), %s441_s12, 1  ;;  %v451_v0 = vmov (!%p159_p3), 0.0   ;;  %v452_v1 = vmov (!%p159_p3), 0   ;;  %v213_v2 = vld [vmem:[%s514_s2] sm:$0xf] (!%p159_p3)  ;;  %vm219_vm0 = vcmask (!%p159_p3), 64512  }
   0x7   : > { %162 = sbr.rel (%p159_p3) target bundleno = 238 (0xee), region = 32  ;;  %287 = vmatprep.mubr.f32.mxu0 (!%p159_p3), %v451_v0  ;;  %426 = vset.pattern.permute.xlu0 (!%p159_p3), %v452_v1  ;;  %v210_v5 = vld [vmem:[%s513_s1] sm:$0xf] (!%p159_p3) }
   0x8   : > { %216 = vperm.xlu0 (!%p159_p3), %426, %v213_v2  }
   0xe   : > { %s521_s12 = smov (!%p191_p4, %s441_s12), 1 }
   0xf   : > { %s398_s18 = sshll.u32 %s521_s12, 4  ;;  %s399_s24 = sshll.u32 %s521_s12, 3 }
  0x10   : > { %s198_s21 = scalar_lea.vmem %s512_s0, %s398_s18  ;;  %s208_s27 = scalar_lea.vmem %s515_s3, %s399_s24 }
  0x11   : > { %v212_v3 = vld [vmem:[%s198_s21 + $0x8] sm:$0xff]  ;;  %v211_v4 = vld [vmem:[%s198_s21] sm:$0xff] }
  0x12   : > { %223 = vmatprep.subr.mxu0 %v212_v3 }
  0x13   : > { %224 = vmatpush1.msra.mxu0 %v211_v4 }
  0x14   : > { %395 = vmatmul.mubr.msk.f32.vlgmr.msra.gmra.mrb[0].mxu0 %vm219_vm0, %v210_v5 }
  0x87   : > { %v217_v6 = vpop.permute.xlu0 %216 }
  0xe7   : > { %v289_v7 = vpop.f32.mrb[0].mxu0 }
  0xe8   : > { %v290_v8 = vadd.f32 %v289_v7, %v217_v6  ;;  %v291_v9 = vpop.f32.mrb[1].mxu0 }
  0xe9   : > { %v292_v10 = vadd.f32 %v291_v9, %v217_v6 }
  0xeb   : > { %v296_v11 = vcombine.low %v290_v8, %v292_v10 }
  0xed   : > { %298 = vst [vmem:[%s208_s27] sm:$0xff] %v296_v11 }
  0xee PF: > { %s13_s14 = sadd.s32 1, %s449_s14   ;;  %s516_s12 = smov %s445_s13 }
  0xef   : > { %p10_p5 = scmp.ge.s32.totalorder %s13_s14, 4   ;;  %s517_s13 = smov %s519_s15 }
  0xf1   :  { %12 = sbr.rel (!%p10_p5) target bundleno = 2 (0x2), region = 62 }

</bundles_post_ra>
